<compile_context>
chip_gen: v7x
topology: tpu7x:2x2x1
jax: 0.10.0
libtpu: 0.0.40
codegen_flags: <defaults>
</compile_context>

<pallas_src>
import functools

import jax
import jax.numpy as jnp
from jax import lax
from jax.experimental import pallas as pl
from jax.experimental.pallas import tpu as pltpu

ALPHA = 0.25
GAMMA = 2.0  # compile-time constant; pow replaced by an explicit square in-kernel

LANE = 128
MAX_TILE_ROWS = 8192   # rows per DMA tile: 4 MiB f32 preds + 1 MiB int8 labels
CHUNK_ROWS = 512       # rows per in-kernel compute chunk (f32 temps ~256 KiB each)
ROW_ALIGN = 32         # int8 native sublane packing => keep row counts 32-aligned


def _round_up(x, m):
    return (x + m - 1) // m * m


def _focal_loss_kernel(nvalid_ref, x_ref, y_ref, out_ref, *, tile_rows, chunk_rows):
    """One grid step over a (tile_rows, 128) slab of flattened [N,2] logits.

    nvalid_ref: SMEM (1,) int32 -- number of valid flattened elements (= 2*N).
    x_ref:      (tile_rows, 128) logits, native dtype (row-major flattened [N,2]).
    y_ref:      (tile_rows, 128) int8 labels (per-sample label replicated over the
                two class lanes, same flattening as x).
    out_ref:    (1, 8, 128) f32 lane-dense per-tile partial sums.
    """
    num_chunks = tile_rows // chunk_rows
    pid = pl.program_id(0)
    is_last = pid == pl.num_programs(0) - 1
    # First out-of-range in-tile flattened index (scalar threshold, only used on the
    # last tile).
    thresh = nvalid_ref[0] - pid * (tile_rows * LANE)

    def chunk_contrib(c):
        x = x_ref[pl.ds(c * chunk_rows, chunk_rows), :].astype(jnp.float32)
        y = y_ref[pl.ds(c * chunk_rows, chunk_rows), :].astype(jnp.int32)
        lane = lax.broadcasted_iota(jnp.int32, x.shape, 1)
        # one_hot_embedding: class index == lane parity for a flattened [N,2] slab.
        t = jnp.where((lane & 1) == y, 1.0, 0.0)
        # Fused algebra with z = x*(2t-1):
        #   1 - pt = sigmoid(-z)
        #   bce_with_logits(x, t) = max(-z, 0) + log1p(exp(-|z|))
        z = x * (2.0 * t - 1.0)
        e = jnp.exp(-jnp.abs(z))                      # shared exponential
        bce = jnp.maximum(-z, 0.0) + jnp.log1p(e)
        one_m_pt = jnp.where(z >= 0.0, e, 1.0) / (1.0 + e)
        w = (0.75 - 0.5 * t) * one_m_pt * one_m_pt    # alpha_t * (1 - pt)**2
        return w * bce, lane

    def reduce_chunk(contrib):
        # (chunk_rows, 128) -> (8, 128): pure vreg adds, no cross-lane XLU reduce.
        return contrib.reshape(chunk_rows // 8, 8, LANE).sum(axis=0)

    @pl.when(jnp.logical_not(is_last))
    def _():
        acc = jnp.zeros((8, LANE), jnp.float32)
        for c in range(num_chunks):        # static unroll; no mask on interior tiles
            contrib, _ = chunk_contrib(c)
            acc = acc + reduce_chunk(contrib)
        out_ref[0] = acc

    @pl.when(is_last)
    def _():
        acc = jnp.zeros((8, LANE), jnp.float32)
        for c in range(num_chunks):
            contrib, lane = chunk_contrib(c)
            row = lax.broadcasted_iota(jnp.int32, contrib.shape, 0)
            in_tile = (c * chunk_rows + row) * LANE + lane
            contrib = jnp.where(in_tile < thresh, contrib, 0.0)
            acc = acc + reduce_chunk(contrib)
        out_ref[0] = acc


def _choose_tiles(rows_min, max_tile_rows, chunk_rows):
    # Aim for >=4 grid steps when the input allows it (v7x megacore sharding), keep
    # 32-row granularity (int8 sublane packing), and make tile_rows an exact multiple
    # of the compute chunk so the inner loop has no ragged tail.
    tr = min(max_tile_rows, _round_up(max((rows_min + 3) // 4, 1), ROW_ALIGN))
    cr = min(chunk_rows, tr)
    tr = _round_up(tr, cr)
    return tr, cr


@functools.partial(jax.jit,
                   static_argnames=("num_classes", "max_tile_rows", "chunk_rows"))
def focal_loss(preds, labels, num_classes=2,
               max_tile_rows=MAX_TILE_ROWS, chunk_rows=CHUNK_ROWS):
    """preds: [N, 2] float logits, labels: [N] int -> scalar f32 loss (sum-reduced)."""
    n, c = preds.shape
    if c != num_classes or num_classes != 2:
        raise NotImplementedError(
            "Pallas FocalLoss kernel is specialized to num_classes=2.")

    e_valid = 2 * n                                     # flattened element count
    rows_min = max((e_valid + LANE - 1) // LANE, 1)
    tile_rows, chunk_rows = _choose_tiles(rows_min, max_tile_rows, chunk_rows)
    rows = _round_up(rows_min, tile_rows)               # no OOB tail blocks
    e_pad = rows * LANE
    grid = rows // tile_rows

    # Layout plumbing (fuses to at most one small copy each under jit):
    #   preds  [N,2] --flatten/pad/reshape-->  x [rows,128]   (free reshape; pad only)
    #   labels [N]   --x2 expand, int8, pad--> y [rows,128]
    x = jnp.pad(preds.reshape(-1), (0, e_pad - e_valid)).reshape(rows, LANE)
    y2 = jnp.broadcast_to(labels.astype(jnp.int8).reshape(n, 1), (n, 2)).reshape(-1)
    y = jnp.pad(y2, (0, e_pad - e_valid)).reshape(rows, LANE)
    nvalid = jnp.full((1,), e_valid, dtype=jnp.int32)

    kernel = functools.partial(_focal_loss_kernel,
                               tile_rows=tile_rows, chunk_rows=chunk_rows)

    partials = pl.pallas_call(
        kernel,
        out_shape=jax.ShapeDtypeStruct((grid, 8, LANE), jnp.float32),
        grid_spec=pltpu.PrefetchScalarGridSpec(
            num_scalar_prefetch=1,
            grid=(grid,),
            in_specs=[
                pl.BlockSpec((tile_rows, LANE), lambda i, nv: (i, 0)),
                pl.BlockSpec((tile_rows, LANE), lambda i, nv: (i, 0)),
            ],
            out_specs=pl.BlockSpec((1, 8, LANE), lambda i, nv: (i, 0, 0)),
        ),
        compiler_params=pltpu.CompilerParams(
            dimension_semantics=("parallel",),
            vmem_limit_bytes=32 * 1024 * 1024,
        ),
    )(nvalid, x, y)

    # Tiny lane-dense partials; the final reduction is a single XLA sum.
    return jnp.sum(partials)


def focal_loss_ref(preds, labels, num_classes=2):
    # Pure-JAX reference mirroring the PyTorch module exactly.
    x = preds.astype(jnp.float32)
    t = jax.nn.one_hot(labels, num_classes, dtype=jnp.float32)
    p = jax.nn.sigmoid(x)
    pt = p * t + (1.0 - p) * (1.0 - t)
    w = (ALPHA * t + (1.0 - ALPHA) * (1.0 - t)) * (1.0 - pt) ** GAMMA
    bce = jnp.maximum(x, 0.0) - x * t + jnp.log1p(jnp.exp(-jnp.abs(x)))
    return jnp.sum(w * bce)


if __name__ == "__main__":
    NUM_CLASSES = 2
    key = jax.random.PRNGKey(0)

    # (batch, chunk_rows):
    #   n=8      -> single tile, heavy padding mask.
    #   n=5000   -> 3-step "parallel" grid with a masked last tile.
    #   n=20000, chunk_rows=32 -> multi-chunk inner loop inside each tile.
    cases = ((8, CHUNK_ROWS), (5000, CHUNK_ROWS), (20000, 32))
    for n, chunk in cases:
        k_preds, k_labels = jax.random.split(jax.random.fold_in(key, n))
        preds = jax.random.normal(k_preds, (n, NUM_CLASSES), dtype=jnp.float32)
        labels = jax.random.randint(k_labels, (n,), 0, NUM_CLASSES, dtype=jnp.int32)

        loss = focal_loss(preds, labels, num_classes=NUM_CLASSES, chunk_rows=chunk)
        loss = jax.block_until_ready(loss)

        ref = focal_loss_ref(preds, labels, num_classes=NUM_CLASSES)
        assert jnp.allclose(loss, ref, rtol=1e-4, atol=1e-4), (n, loss, ref)

    print("KERNEL_OK")
</pallas_src>

<mosaic_0001>
module attributes {stable_mosaic.version = 11 : i64} {
  func.func @_focal_loss_kernel(%arg0: i32, %arg1: memref<1xi32, #tpu.memory_space<smem>>, %arg2: memref<32x128xf32, #tpu.memory_space<vmem>>, %arg3: memref<32x128xi8, #tpu.memory_space<vmem>>, %arg4: memref<1x8x128xf32, #tpu.memory_space<vmem>>) attributes {dimension_semantics = [#tpu.dimension_semantics<parallel>], iteration_bounds = array<i64: 1>, scalar_prefetch = 1 : i64, scratch_operands = 0 : i64, tpu.core_type = #tpu.core_type<tc>, window_params = [{transform_indices = @transform_0, window_bounds = array<i64: 32, 128>}, {transform_indices = @transform_1, window_bounds = array<i64: 32, 128>}, {transform_indices = @transform_2, window_bounds = array<i64: 1, 8, 128>}]} {
    %c0_i32 = arith.constant 0 : i32
    %0 = arith.cmpi eq, %arg0, %c0_i32 : i32
    %c0 = arith.constant 0 : index
    %1 = memref.load %arg1[%c0] : memref<1xi32, #tpu.memory_space<smem>>
    %c4096_i32 = arith.constant 4096 : i32
    %2 = arith.muli %arg0, %c4096_i32 : i32
    %3 = arith.subi %1, %2 : i32
    %true = arith.constant true
    %4 = arith.xori %0, %true : i1
    %5 = arith.extui %4 : i1 to i32
    %c0_i32_0 = arith.constant 0 : i32
    %6 = arith.cmpi ne, %5, %c0_i32_0 : i32
    scf.if %6 {
      %cst = arith.constant 0.000000e+00 : f32
      %9 = vector.broadcast %cst : f32 to vector<8x128xf32>
      %c0_2 = arith.constant 0 : index
      %c0_3 = arith.constant 0 : index
      %10 = vector.load %arg2[%c0_2, %c0_3] : memref<32x128xf32, #tpu.memory_space<vmem>>, vector<32x128xf32>
      %c0_4 = arith.constant 0 : index
      %c0_5 = arith.constant 0 : index
      %11 = vector.load %arg3[%c0_4, %c0_5] : memref<32x128xi8, #tpu.memory_space<vmem>>, vector<32x128xi8>
      %12 = arith.extsi %11 : vector<32x128xi8> to vector<32x128xi32>
      %13 = tpu.iota {dimensions = array<i32: 1>} : vector<32x128xi32>
      %c1_i32 = arith.constant 1 : i32
      %14 = vector.broadcast %c1_i32 : i32 to vector<32x128xi32>
      %15 = arith.andi %13, %14 : vector<32x128xi32>
      %16 = arith.cmpi eq, %15, %12 : vector<32x128xi32>
      %cst_6 = arith.constant 1.000000e+00 : f32
      %cst_7 = arith.constant 0.000000e+00 : f32
      %17 = vector.broadcast %cst_6 : f32 to vector<32x128xf32>
      %18 = vector.broadcast %cst_7 : f32 to vector<32x128xf32>
      %19 = arith.select %16, %17, %18 : vector<32x128xi1>, vector<32x128xf32>
      %cst_8 = arith.constant 2.000000e+00 : f32
      %20 = vector.broadcast %cst_8 : f32 to vector<32x128xf32>
      %21 = arith.mulf %20, %19 : vector<32x128xf32>
      %cst_9 = arith.constant 1.000000e+00 : f32
      %22 = vector.broadcast %cst_9 : f32 to vector<32x128xf32>
      %23 = arith.subf %21, %22 : vector<32x128xf32>
      %24 = arith.mulf %10, %23 : vector<32x128xf32>
      %25 = math.absf %24 : vector<32x128xf32>
      %cst_10 = arith.constant 0.000000e+00 : f32
      %26 = vector.broadcast %cst_10 : f32 to vector<32x128xf32>
      %27 = arith.subf %26, %25 : vector<32x128xf32>
      %28 = math.exp %27 : vector<32x128xf32>
      %cst_11 = arith.constant 0.000000e+00 : f32
      %29 = vector.broadcast %cst_11 : f32 to vector<32x128xf32>
      %30 = arith.subf %29, %24 : vector<32x128xf32>
      %cst_12 = arith.constant 0.000000e+00 : f32
      %31 = vector.broadcast %cst_12 : f32 to vector<32x128xf32>
      %32 = arith.maximumf %30, %31 : vector<32x128xf32>
      %33 = math.log1p %28 : vector<32x128xf32>
      %34 = arith.addf %32, %33 : vector<32x128xf32>
      %cst_13 = arith.constant 0.000000e+00 : f32
      %35 = vector.broadcast %cst_13 : f32 to vector<32x128xf32>
      %36 = arith.cmpf oge, %24, %35 : vector<32x128xf32>
      %cst_14 = arith.constant 1.000000e+00 : f32
      %37 = vector.broadcast %cst_14 : f32 to vector<32x128xf32>
      %38 = arith.select %36, %28, %37 : vector<32x128xi1>, vector<32x128xf32>
      %cst_15 = arith.constant 1.000000e+00 : f32
      %39 = vector.broadcast %cst_15 : f32 to vector<32x128xf32>
      %40 = arith.addf %39, %28 : vector<32x128xf32>
      %41 = arith.divf %38, %40 : vector<32x128xf32>
      %cst_16 = arith.constant 5.000000e-01 : f32
      %42 = vector.broadcast %cst_16 : f32 to vector<32x128xf32>
      %43 = arith.mulf %42, %19 : vector<32x128xf32>
      %cst_17 = arith.constant 7.500000e-01 : f32
      %44 = vector.broadcast %cst_17 : f32 to vector<32x128xf32>
      %45 = arith.subf %44, %43 : vector<32x128xf32>
      %46 = arith.mulf %45, %41 : vector<32x128xf32>
      %47 = arith.mulf %46, %41 : vector<32x128xf32>
      %48 = arith.mulf %47, %34 : vector<32x128xf32>
      %49 = vector.shape_cast %48 : vector<32x128xf32> to vector<4x8x128xf32>
      %cst_18 = arith.constant dense<0.000000e+00> : vector<8x128xf32>
      %50 = vector.multi_reduction <add>, %49, %cst_18 [0] : vector<4x8x128xf32> to vector<8x128xf32>
      %51 = arith.addf %9, %50 : vector<8x128xf32>
      %c0_19 = arith.constant 0 : index
      %c0_20 = arith.constant 0 : index
      %c0_21 = arith.constant 0 : index
      %52 = vector.load %arg4[%c0_19, %c0_20, %c0_21] : memref<1x8x128xf32, #tpu.memory_space<vmem>>, vector<1x8x128xf32>
      %53 = vector.shape_cast %52 : vector<1x8x128xf32> to vector<8x128xf32>
      %54 = vector.shape_cast %51 : vector<8x128xf32> to vector<1x8x128xf32>
      tpu.vector_store %arg4[%c0_19, %c0_20, %c0_21], %54 {strides = array<i32>} : memref<1x8x128xf32, #tpu.memory_space<vmem>>, vector<1x8x128xf32>,
    } else {
    }
    %7 = arith.extui %0 : i1 to i32
    %c0_i32_1 = arith.constant 0 : i32
    %8 = arith.cmpi ne, %7, %c0_i32_1 : i32
    scf.if %8 {
      %cst = arith.constant 0.000000e+00 : f32
      %9 = vector.broadcast %cst : f32 to vector<8x128xf32>
      %c0_2 = arith.constant 0 : index
      %c0_3 = arith.constant 0 : index
      %10 = vector.load %arg2[%c0_2, %c0_3] : memref<32x128xf32, #tpu.memory_space<vmem>>, vector<32x128xf32>
      %c0_4 = arith.constant 0 : index
      %c0_5 = arith.constant 0 : index
      %11 = vector.load %arg3[%c0_4, %c0_5] : memref<32x128xi8, #tpu.memory_space<vmem>>, vector<32x128xi8>
      %12 = arith.extsi %11 : vector<32x128xi8> to vector<32x128xi32>
      %13 = tpu.iota {dimensions = array<i32: 1>} : vector<32x128xi32>
      %c1_i32 = arith.constant 1 : i32
      %14 = vector.broadcast %c1_i32 : i32 to vector<32x128xi32>
      %15 = arith.andi %13, %14 : vector<32x128xi32>
      %16 = arith.cmpi eq, %15, %12 : vector<32x128xi32>
      %cst_6 = arith.constant 1.000000e+00 : f32
      %cst_7 = arith.constant 0.000000e+00 : f32
      %17 = vector.broadcast %cst_6 : f32 to vector<32x128xf32>
      %18 = vector.broadcast %cst_7 : f32 to vector<32x128xf32>
      %19 = arith.select %16, %17, %18 : vector<32x128xi1>, vector<32x128xf32>
      %cst_8 = arith.constant 2.000000e+00 : f32
      %20 = vector.broadcast %cst_8 : f32 to vector<32x128xf32>
      %21 = arith.mulf %20, %19 : vector<32x128xf32>
      %cst_9 = arith.constant 1.000000e+00 : f32
      %22 = vector.broadcast %cst_9 : f32 to vector<32x128xf32>
      %23 = arith.subf %21, %22 : vector<32x128xf32>
      %24 = arith.mulf %10, %23 : vector<32x128xf32>
      %25 = math.absf %24 : vector<32x128xf32>
      %cst_10 = arith.constant 0.000000e+00 : f32
      %26 = vector.broadcast %cst_10 : f32 to vector<32x128xf32>
      %27 = arith.subf %26, %25 : vector<32x128xf32>
      %28 = math.exp %27 : vector<32x128xf32>
      %cst_11 = arith.constant 0.000000e+00 : f32
      %29 = vector.broadcast %cst_11 : f32 to vector<32x128xf32>
      %30 = arith.subf %29, %24 : vector<32x128xf32>
      %cst_12 = arith.constant 0.000000e+00 : f32
      %31 = vector.broadcast %cst_12 : f32 to vector<32x128xf32>
      %32 = arith.maximumf %30, %31 : vector<32x128xf32>
      %33 = math.log1p %28 : vector<32x128xf32>
      %34 = arith.addf %32, %33 : vector<32x128xf32>
      %cst_13 = arith.constant 0.000000e+00 : f32
      %35 = vector.broadcast %cst_13 : f32 to vector<32x128xf32>
      %36 = arith.cmpf oge, %24, %35 : vector<32x128xf32>
      %cst_14 = arith.constant 1.000000e+00 : f32
      %37 = vector.broadcast %cst_14 : f32 to vector<32x128xf32>
      %38 = arith.select %36, %28, %37 : vector<32x128xi1>, vector<32x128xf32>
      %cst_15 = arith.constant 1.000000e+00 : f32
      %39 = vector.broadcast %cst_15 : f32 to vector<32x128xf32>
      %40 = arith.addf %39, %28 : vector<32x128xf32>
      %41 = arith.divf %38, %40 : vector<32x128xf32>
      %cst_16 = arith.constant 5.000000e-01 : f32
      %42 = vector.broadcast %cst_16 : f32 to vector<32x128xf32>
      %43 = arith.mulf %42, %19 : vector<32x128xf32>
      %cst_17 = arith.constant 7.500000e-01 : f32
      %44 = vector.broadcast %cst_17 : f32 to vector<32x128xf32>
      %45 = arith.subf %44, %43 : vector<32x128xf32>
      %46 = arith.mulf %45, %41 : vector<32x128xf32>
      %47 = arith.mulf %46, %41 : vector<32x128xf32>
      %48 = arith.mulf %47, %34 : vector<32x128xf32>
      %49 = tpu.iota {dimensions = array<i32: 0>} : vector<32x128xi32>
      %c0_i32_18 = arith.constant 0 : i32
      %50 = vector.broadcast %c0_i32_18 : i32 to vector<32x128xi32>
      %51 = arith.addi %50, %49 : vector<32x128xi32>
      %c128_i32 = arith.constant 128 : i32
      %52 = vector.broadcast %c128_i32 : i32 to vector<32x128xi32>
      %53 = arith.muli %51, %52 : vector<32x128xi32>
      %54 = arith.addi %53, %13 : vector<32x128xi32>
      %55 = vector.broadcast %3 : i32 to vector<32x128xi32>
      %56 = arith.cmpi slt, %54, %55 : vector<32x128xi32>
      %cst_19 = arith.constant 0.000000e+00 : f32
      %57 = vector.broadcast %cst_19 : f32 to vector<32x128xf32>
      %58 = arith.select %56, %48, %57 : vector<32x128xi1>, vector<32x128xf32>
      %59 = vector.shape_cast %58 : vector<32x128xf32> to vector<4x8x128xf32>
      %cst_20 = arith.constant dense<0.000000e+00> : vector<8x128xf32>
      %60 = vector.multi_reduction <add>, %59, %cst_20 [0] : vector<4x8x128xf32> to vector<8x128xf32>
      %61 = arith.addf %9, %60 : vector<8x128xf32>
      %c0_21 = arith.constant 0 : index
      %c0_22 = arith.constant 0 : index
      %c0_23 = arith.constant 0 : index
      %62 = vector.load %arg4[%c0_21, %c0_22, %c0_23] : memref<1x8x128xf32, #tpu.memory_space<vmem>>, vector<1x8x128xf32>
      %63 = vector.shape_cast %62 : vector<1x8x128xf32> to vector<8x128xf32>
      %64 = vector.shape_cast %61 : vector<8x128xf32> to vector<1x8x128xf32>
      tpu.vector_store %arg4[%c0_21, %c0_22, %c0_23], %64 {strides = array<i32>} : memref<1x8x128xf32, #tpu.memory_space<vmem>>, vector<1x8x128xf32>,
    } else {
    }
    return
  }
  func.func @transform_0(%arg0: i32, %arg1: memref<1xi32, #tpu.memory_space<smem>>) -> (i32, i32) {
    %c0_i32 = arith.constant 0 : i32
    %c0_i32_0 = arith.constant 0 : i32
    return %arg0, %c0_i32 : i32, i32
  }
  func.func @transform_1(%arg0: i32, %arg1: memref<1xi32, #tpu.memory_space<smem>>) -> (i32, i32) {
    %c0_i32 = arith.constant 0 : i32
    %c0_i32_0 = arith.constant 0 : i32
    return %arg0, %c0_i32 : i32, i32
  }
  func.func @transform_2(%arg0: i32, %arg1: memref<1xi32, #tpu.memory_space<smem>>) -> (i32, i32, i32) {
    %c0_i32 = arith.constant 0 : i32
    %c0_i32_0 = arith.constant 0 : i32
    %c0_i32_1 = arith.constant 0 : i32
    return %arg0, %c0_i32, %c0_i32_0 : i32, i32, i32
  }
}

</mosaic_0001>

<bundles_post_ra>
// kernel: focal_loss.1
= control target key start
LH: loop header
LB: loop body
LE: loop exit
PB: predicated region body
PF: predicated region fallthrough
CT: control target
= control target key end

     0   :  { %v174_v0 = vlaneseq  ;;  %v365_v8 = vmov 0.0   ;;  %s530_s2 = inlined_call_operand.vmem [shape: s8[32,128], index: 2, kind: input, shape index: {}]   ;;  %s531_s1 = inlined_call_operand.vmem [shape: f32[32,128], index: 1, kind: input, shape index: {}]   ;;  %s532_s0 = inlined_call_operand.<no memory space> [shape: s32[1], index: 0, kind: input, shape index: {}]   ;;  %s533_s3 = inlined_call_operand.vmem [shape: f32[1,8,128], index: 3, kind: output, shape index: {}]  }
   0x1   :  { %v169_v1 = vld [vmem:[%s530_s2] sm:$0xff]  ;;  %v166_v18 = vld [vmem:[%s531_s1 + $0x8] sm:$0xff]  ;;  %v167_v19 = vld [vmem:[%s531_s1 + $0x10] sm:$0xff]  ;;  %v440_v54 = vstv %s532_s0 }
   0x2   :  { %v389_v2 = vand.u32 127, %v174_v0  ;;  %v170_v3 = vunpack.c.0.s8 %v169_v1  ;;  %v171_v4 = vunpack.c.1.s8 %v169_v1  ;;  %v172_v5 = vunpack.c.2.s8 %v169_v1  ;;  %v165_v13 = vld [vmem:[%s531_s1] sm:$0xff]  ;;  %v168_v20 = vld [vmem:[%s531_s1 + $0x18] sm:$0xff] }
   0x3   :  { %v173_v6 = vunpack.c.3.s8 %v169_v1  ;;  %v302_v42 = vshrl.u32 %v174_v0, 7 }
   0x4   :  { %v176_v7 = vand.u32 1, %v389_v2 }
   0x5   :  { %v435_v53 = vadd.s32 8, %v302_v42  ;;  %v443_v56 = vadd.s32 16, %v302_v42  ;;  %v445_v57 = vadd.s32 24, %v302_v42  ;;  %v306_v61 = vmul.u32 128, %v302_v42 }
   0x6   :  { %vm177_vm0 = vcmp.eq.s32.totalorder %v176_v7, %v170_v3  ;;  %vm178_vm1 = vcmp.eq.s32.totalorder %v176_v7, %v171_v4  ;;  %vm179_vm2 = vcmp.eq.s32.totalorder %v176_v7, %v172_v5  ;;  %vm180_vm3 = vcmp.eq.s32.totalorder %v176_v7, %v173_v6 }
   0x7   :  { %v181_v9 = vsel %vm177_vm0, 1.0, %v365_v8  ;;  %v182_v10 = vsel %vm178_vm1, 1.0, %v365_v8  ;;  %v183_v11 = vsel %vm179_vm2, 1.0, %v365_v8  ;;  %v184_v12 = vsel %vm180_vm3, 1.0, %v365_v8 }
   0x8   :  { %v185_v14 = vmul.f32 2.0, %v181_v9  ;;  %v186_v15 = vmul.f32 2.0, %v182_v10  ;;  %v187_v16 = vmul.f32 2.0, %v183_v11  ;;  %v188_v17 = vmul.f32 2.0, %v184_v12 }
   0x9   :  { %v424_v47 = vmul.f32 0.5, %v181_v9  ;;  %v426_v48 = vmul.f32 0.5, %v182_v10  ;;  %v431_v51 = vmul.f32 0.5, %v183_v11  ;;  %v433_v52 = vmul.f32 0.5, %v184_v12 }
   0xa   :  { %v336_v21 = vadd.f32 -1.0, %v185_v14  ;;  %v337_v22 = vadd.f32 -1.0, %v186_v15  ;;  %v338_v23 = vadd.f32 -1.0, %v187_v16  ;;  %v339_v24 = vadd.f32 -1.0, %v188_v17 }
   0xb   :  { %v285_v59 = vsub.f32 0.75, %v424_v47  ;;  %v286_v60 = vsub.f32 0.75, %v426_v48  ;;  %v287_v63 = vsub.f32 0.75, %v431_v51  ;;  %v288_v0 = vsub.f32 0.75, %v433_v52 }
   0xc   :  { %v404_v25 = vmul.f32 %v336_v21, %v165_v13  ;;  %v406_v26 = vmul.f32 %v337_v22, %v166_v18  ;;  %v408_v27 = vmul.f32 %v338_v23, %v167_v19  ;;  %v410_v28 = vmul.f32 %v339_v24, %v168_v20 }
   0xd   :  { %v307_v6 = vmul.u32 128, %v435_v53  ;;  %v308_v7 = vmul.u32 128, %v443_v56  ;;  %v461_v10 = vadd.s32 %v306_v61, %v389_v2 }
   0xe   :  { %v197_v29 = vand.u32 2147483647, %v404_v25  ;;  %v198_v30 = vand.u32 2147483647, %v406_v26  ;;  %v199_v31 = vand.u32 2147483647, %v408_v27 }
   0xf   :  { %v200_v32 = vand.u32 2147483647, %v410_v28  ;;  %v213_v1 = vsub.f32 0.0, %v404_v25  ;;  %v214_v3 = vsub.f32 0.0, %v406_v26  ;;  %v215_v8 = vsub.f32 0.0, %v408_v27 }
  0x10   :  { %v201_v33 = vsub.f32 0.0, %v197_v29  ;;  %v202_v34 = vsub.f32 0.0, %v198_v30  ;;  %v203_v35 = vsub.f32 0.0, %v199_v31  ;;  %v216_v11 = vsub.f32 0.0, %v410_v28 }
  0x11   :  { %v204_v36 = vsub.f32 0.0, %v200_v32  ;;  %v217_v14 = vmax.f32 %v213_v1, 0.0  ;;  %v218_v15 = vmax.f32 %v214_v3, 0.0  ;;  %vm261_vm4 = vcmp.ge.f32.partialorder %v404_v25, 0.0 }
  0x12   :  { %v205_v37 = vmul.f32 1.442695, %v201_v33  ;;  %v207_v38 = vmul.f32 1.442695, %v202_v34  ;;  %v209_v39 = vmul.f32 1.442695, %v203_v35  ;;  %vm315_vm12 = vcmp.lt.s32.totalorder %v461_v10, %v440_v54 }
  0x13   :  { %v211_v40 = vmul.f32 1.442695, %v204_v36  ;;  %vm262_vm5 = vcmp.ge.f32.partialorder %v406_v26, 0.0  ;;  %vm263_vm6 = vcmp.ge.f32.partialorder %v408_v27, 0.0  ;;  %vm264_vm8 = vcmp.ge.f32.partialorder %v410_v28, 0.0 }
  0x14   :  { %341 = vpow2.f32 %v205_v37  ;;  %v219_v37 = vmax.f32 %v215_v8, 0.0  ;;  %v309_v56 = vmul.u32 128, %v445_v57  ;;  %v220_v61 = vmax.f32 %v216_v11, 0.0 }
  0x15   :  { %343 = vpow2.f32 %v207_v38  ;;  %v311_v27 = vadd.s32 %v307_v6, %v389_v2 }
  0x16   :  { %345 = vpow2.f32 %v209_v39 }
  0x17   :  { %347 = vpow2.f32 %v211_v40  ;;  %vm316_vm13 = vcmp.lt.s32.totalorder %v311_v27, %v440_v54 }
  0x1e   :  { %v416_v41 = vpop.eup %341 }
  0x1f   :  { %v418_v43 = vpop.eup %343  ;;  %v221_v44 = vadd.f32 1.0, %v416_v41  ;;  %v224_v58 = vmul.f32 -0.5, %v416_v41  ;;  %v227_v12 = vand.u32 2147483647, %v416_v41  ;;  %v265_v35 = vsel %vm261_vm4, %v416_v41, 1.0 }
  0x20   :  { %v421_v45 = vpop.eup %345  ;;  %v230_v46 = vadd.f32 1.0, %v418_v43  ;;  %v233_v62 = vmul.f32 -0.5, %v418_v43  ;;  %v236_v16 = vand.u32 2147483647, %v418_v43  ;;  %v266_v40 = vsel %vm262_vm5, %v418_v43, 1.0 }
  0x21   :  { %v428_v49 = vpop.eup %347  ;;  %349 = vlog2.f32 %v221_v44  ;;  %v239_v50 = vadd.f32 1.0, %v421_v45  ;;  %v242_v4 = vmul.f32 -0.5, %v421_v45  ;;  %v225_v9 = vadd.f32 1.0, %v224_v58 }
  0x22   :  { %351 = vlog2.f32 %v230_v46  ;;  %v248_v55 = vadd.f32 1.0, %v428_v49  ;;  %v251_v5 = vmul.f32 -0.5, %v428_v49  ;;  %v234_v13 = vadd.f32 1.0, %v233_v62 }
  0x23   :  { %353 = vlog2.f32 %v239_v50  ;;  %v243_v17 = vadd.f32 1.0, %v242_v4  ;;  %v245_v19 = vand.u32 2147483647, %v421_v45  ;;  %v226_v23 = vmul.f32 %v416_v41, %v225_v9 }
  0x24   :  { %355 = vlog2.f32 %v248_v55  ;;  %v252_v20 = vadd.f32 1.0, %v251_v5  ;;  %v254_v24 = vand.u32 2147483647, %v428_v49  ;;  %vm472_vm7 = vcmp.lt.f32.partialorder %v227_v12, 0.0004427343 }
  0x25   :  { %357 = vrcp.f32 %v221_v44  ;;  %v235_v32 = vmul.f32 %v418_v43, %v234_v13  ;;  %vm478_vm9 = vcmp.lt.f32.partialorder %v236_v16, 0.0004427343  ;;  %v244_v34 = vmul.f32 %v421_v45, %v243_v17 }
  0x26   :  { %359 = vrcp.f32 %v230_v46  ;;  %vm484_vm10 = vcmp.lt.f32.partialorder %v245_v19, 0.0004427343  ;;  %v253_v39 = vmul.f32 %v428_v49, %v252_v20  ;;  %vm494_vm11 = vcmp.lt.f32.partialorder %v254_v24, 0.0004427343 }
  0x27   :  { %361 = vrcp.f32 %v239_v50  ;;  %v267_v41 = vsel %vm263_vm6, %v421_v45, 1.0  ;;  %v268_v26 = vsel %vm264_vm8, %v428_v49, 1.0  ;;  %v312_v9 = vadd.s32 %v308_v7, %v389_v2 }
  0x28   :  { %363 = vrcp.f32 %v248_v55  ;;  %v313_v13 = vadd.s32 %v309_v56, %v389_v2 }
  0x29   :  { %vm317_vm14 = vcmp.lt.s32.totalorder %v312_v9, %v440_v54 }
  0x2a   :  { %vm318_vm15 = vcmp.lt.s32.totalorder %v313_v13, %v440_v54 }
  0x2b   :  { %v350_v18 = vpop.eup %349 }
  0x2c   :  { %v352_v21 = vpop.eup %351  ;;  %v223_v22 = vmul.f32 0.6931472, %v350_v18 }
  0x2d   :  { %v354_v29 = vpop.eup %353  ;;  %v232_v31 = vmul.f32 0.6931472, %v352_v21 }
  0x2e   :  { %v241_v33 = vmul.f32 0.6931472, %v354_v29  ;;  %v356_v36 = vpop.eup %355  ;;  %v229_v44 = vsel %vm472_vm7, %v226_v23, %v223_v22 }
  0x2f   :  { %v358_v42 = vpop.eup %357  ;;  %v250_v46 = vmul.f32 0.6931472, %v356_v36  ;;  %v238_v55 = vsel %vm478_vm9, %v235_v32, %v232_v31  ;;  %v257_v4 = vadd.f32 %v229_v44, %v217_v14 }
  0x30   :  { %v360_v53 = vpop.eup %359  ;;  %v274_v43 = vmul.f32 %v358_v42, %v265_v35  ;;  %v247_v62 = vsel %vm484_vm10, %v244_v34, %v241_v33  ;;  %v258_v49 = vadd.f32 %v238_v55, %v218_v15 }
  0x31   :  { %v362_v58 = vpop.eup %361  ;;  %v276_v1 = vmul.f32 %v360_v53, %v266_v40  ;;  %v256_v3 = vsel %vm494_vm11, %v253_v39, %v250_v46  ;;  %v259_v11 = vadd.f32 %v247_v62, %v219_v37 }
  0x32   :  { %v364_v45 = vpop.eup %363  ;;  %v278_v5 = vmul.f32 %v362_v58, %v267_v41  ;;  %v289_v28 = vmul.f32 %v285_v59, %v274_v43  ;;  %v260_v16 = vadd.f32 %v256_v3, %v220_v61 }
  0x33   :  { %v280_v8 = vmul.f32 %v364_v45, %v268_v26  ;;  %v290_v57 = vmul.f32 %v286_v60, %v276_v1 }
  0x34   :  { %v291_v6 = vmul.f32 %v287_v63, %v278_v5  ;;  %v293_v12 = vmul.f32 %v289_v28, %v274_v43 }
  0x35   :  { %v292_v14 = vmul.f32 %v288_v0, %v280_v8  ;;  %v294_v47 = vmul.f32 %v290_v57, %v276_v1 }
  0x36   :  { %v295_v59 = vmul.f32 %v291_v6, %v278_v5  ;;  %v297_v48 = vmul.f32 %v293_v12, %v257_v4 }
  0x37   :  { %v296_v60 = vmul.f32 %v292_v14, %v280_v8  ;;  %v298_v7 = vmul.f32 %v294_v47, %v258_v49 }
  0x38   :  { %v299_v51 = vmul.f32 %v295_v59, %v259_v11  ;;  %v319_v2 = vsel %vm315_vm12, %v297_v48, 0.0 }
  0x39   :  { %v300_v63 = vmul.f32 %v296_v60, %v260_v16  ;;  %v320_v15 = vsel %vm316_vm13, %v298_v7, 0.0 }
  0x3a   :  { %v321_v52 = vsel %vm317_vm14, %v299_v51, 0.0  ;;  %v323_v0 = vadd.f32 %v320_v15, %v319_v2 }
  0x3b   :  { %v322_v17 = vsel %vm318_vm15, %v300_v63, 0.0 }
  0x3c   :  { %v324_v18 = vadd.f32 %v323_v0, %v321_v52 }
  0x3e   :  { %v325_v19 = vadd.f32 %v324_v18, %v322_v17 }
  0x40   :  { %327 = vst [vmem:[%s533_s3] sm:$0xff] %v325_v19 }

</bundles_post_ra>
